<compile_context>
chip_gen: v7x
topology: tpu7x:2x2x1
jax: 0.10.0
libtpu: 0.0.40
codegen_flags: <defaults>
</compile_context>

<pallas_src>
import functools
import numpy as np
import jax
import jax.numpy as jnp
from jax.experimental import pallas as pl
from jax.experimental.pallas import tpu as pltpu

PATCH = 16  # hard-coded in SegMenter.__init__


def _round_up(x, m):
    return ((x + m - 1) // m) * m


# ----------------------------- kernel 1: tiled linear (patch embedding) ------------

def _linear_kernel(x_ref, w_ref, b_ref, o_ref):
    acc = jax.lax.dot_general(
        x_ref[...].astype(jnp.bfloat16), w_ref[...].astype(jnp.bfloat16),
        dimension_numbers=(((1,), (0,)), ((), ())),
        preferred_element_type=jnp.float32)
    o_ref[...] = (acc + b_ref[...].astype(jnp.float32)).astype(o_ref.dtype)


def linear_tiled(x2d, w, b, *, tm=None):
    """y = x @ w + b, tiled over rows with a 'parallel' grid (weight-stationary)."""
    M, K = x2d.shape
    N = w.shape[1]
    if tm is None:
        tm = 512 if M >= 4096 else 256        # review: bigger tiles for large M
    tm = min(tm, _round_up(M, 8))
    Mp = _round_up(M, tm)
    xp = jnp.pad(x2d, ((0, Mp - M), (0, 0))) if Mp != M else x2d
    vmem_limit = int(min(max(8 * (tm * K + K * N + tm * N), 32 << 20), 64 << 20))
    out = pl.pallas_call(
        _linear_kernel,
        out_shape=jax.ShapeDtypeStruct((Mp, N), x2d.dtype),
        grid=(Mp // tm,),
        in_specs=[pl.BlockSpec((tm, K), lambda i: (i, 0)),
                  pl.BlockSpec((K, N), lambda i: (0, 0)),
                  pl.BlockSpec((1, N), lambda i: (0, 0))],
        out_specs=pl.BlockSpec((tm, N), lambda i: (i, 0)),
        compiler_params=pltpu.CompilerParams(
            dimension_semantics=("parallel",),
            vmem_limit_bytes=vmem_limit),
    )(xp, w, b.reshape(1, N))
    return out[:M] if Mp != M else out


# ----------------------------- kernel 2: fused transformer block -------------------

def _encoder_block_kernel(xp_ref, cls_ref, posp_ref, posc_ref,
                          ln1_g, ln1_b, qkv_w, qkv_b, proj_w, proj_b,
                          ln2_g, ln2_b, mlp1_w, mlp1_b, mlp2_w, mlp2_b,
                          encln_g, encln_b, o_ref, *, heads, scale):
    f32 = jnp.float32
    bf16 = jnp.bfloat16

    def mm(a, b):   # 2D matmul: bf16 MXU operands, f32 accumulation
        return jax.lax.dot_general(
            a.astype(bf16), b.astype(bf16),
            dimension_numbers=(((1,), (0,)), ((), ())),
            preferred_element_type=f32)

    def ln(v, g_r, b_r):
        mu = jnp.mean(v, axis=-1, keepdims=True)
        var = jnp.mean(jnp.square(v - mu), axis=-1, keepdims=True)
        return (v - mu) * jax.lax.rsqrt(var + 1e-5) * g_r[...].astype(f32) \
            + b_r[...].astype(f32)

    xp = xp_ref[0].astype(f32)                                   # (N, D) patch tokens
    N, D = xp.shape
    hd = D // heads

    # cls / positional embedding folded in; cls token lives at row N (= T-1) so the
    # final "drop cls" is an aligned prefix slice (no sublane-offset relayout).
    x_cls = cls_ref[...].astype(f32) + posc_ref[...].astype(f32)            # (1, D)
    x = jnp.concatenate([xp + posp_ref[...].astype(f32), x_cls], axis=0)    # (T, D)

    # --- attention sub-block (pre-norm) ---
    h = ln(x, ln1_g, ln1_b)
    qkv = mm(h, qkv_w[...]) + qkv_b[...].astype(f32)             # (T, 3*D)
    q = qkv[:, 0:D] * scale                                      # fold scale into q
    k = qkv[:, D:2 * D]
    v = qkv[:, 2 * D:3 * D]
    ctx = []
    for hx in range(heads):
        sl = slice(hx * hd, (hx + 1) * hd)
        s = jax.lax.dot_general(q[:, sl].astype(bf16), k[:, sl].astype(bf16),
                                dimension_numbers=(((1,), (1,)), ((), ())),
                                preferred_element_type=f32)      # (T, T)
        s = s - jnp.max(s, axis=-1, keepdims=True)
        p = jnp.exp(s)
        p = p * pl.reciprocal(jnp.sum(p, axis=-1, keepdims=True), approx=True)
        ctx.append(mm(p, v[:, sl]))                              # (T, hd)
    # concat heads -> ONE full-depth output projection (K = D, fills the MXU)
    ctx = jnp.concatenate(ctx, axis=-1)                          # (T, D)
    x = x + mm(ctx, proj_w[...]) + proj_b[...].astype(f32)

    # --- MLP sub-block (pre-norm) ---
    h = ln(x, ln2_g, ln2_b)
    h = mm(h, mlp1_w[...]) + mlp1_b[...].astype(f32)
    # TODO(synk): switch to erf-based GELU if/when lax.erf lowering is available.
    c = 0.7978845608028654  # sqrt(2/pi)
    h = 0.5 * h * (1.0 + jnp.tanh(c * (h + 0.044715 * h * h * h)))
    h = mm(h, mlp2_w[...]) + mlp2_b[...].astype(f32)
    x = x + h

    # --- final encoder layernorm; drop the cls token (last row) with aligned slice ---
    x = ln(x, encln_g, encln_b)
    o_ref[0] = x[:N, :].astype(o_ref.dtype)


def encoder_block(xp, params, *, heads):
    """Fused encoder block on patch embeddings xp (B, N, D) -> features (B, N, D)."""
    B, N, D = xp.shape
    T = N + 1
    mlp_dim = params['mlp1_w'].shape[1]
    scale = float((D // heads) ** -0.5)
    bf = lambda a: a.astype(jnp.bfloat16)   # review: pre-cast weights to bf16
    vec = lambda a: a.reshape(1, -1)
    args = [xp,
            params['cls'].reshape(1, D),
            params['pos'][0, 1:, :],          # (N, D) patch positional embeddings
            params['pos'][0, 0:1, :],         # (1, D) cls positional embedding
            vec(params['ln1_g']), vec(params['ln1_b']),
            bf(params['qkv_w']), vec(params['qkv_b']),
            bf(params['proj_w']), vec(params['proj_b']),
            vec(params['ln2_g']), vec(params['ln2_b']),
            bf(params['mlp1_w']), vec(params['mlp1_b']),
            bf(params['mlp2_w']), vec(params['mlp2_b']),
            vec(params['enc_ln_g']), vec(params['enc_ln_b'])]
    big_weights = {6, 8, 12, 14}              # qkv_w, proj_w, mlp1_w, mlp2_w

    # explicit scoped-VMEM limit (v5e default is 16 MiB); capped at v7x physical VMEM
    w_bytes = 2 * (3 * D * D + D * D + 2 * D * mlp_dim)
    act_bytes = 4 * (4 * N * D + 12 * T * D + 2 * T * 3 * D + 3 * T * T + 2 * T * mlp_dim)
    vmem_limit = int(min(max(2 * (w_bytes + act_bytes), 32 << 20), 64 << 20))

    def build_and_run(single_buffer_weights):
        in_specs = [pl.BlockSpec((1, N, D), lambda b: (b, 0, 0))]
        for idx, a in enumerate(args[1:], start=1):
            if single_buffer_weights and idx in big_weights:
                # grid-invariant weights: single buffer halves their VMEM footprint
                spec = pl.BlockSpec(a.shape, lambda b: (0, 0),
                                    pipeline_mode=pl.Buffered(1))
            else:
                spec = pl.BlockSpec(a.shape, lambda b: (0, 0))
            in_specs.append(spec)
        return pl.pallas_call(
            functools.partial(_encoder_block_kernel, heads=heads, scale=scale),
            out_shape=jax.ShapeDtypeStruct((B, N, D), xp.dtype),
            grid=(B,),
            in_specs=in_specs,
            out_specs=pl.BlockSpec((1, N, D), lambda b: (b, 0, 0)),
            compiler_params=pltpu.CompilerParams(
                dimension_semantics=("parallel",),
                vmem_limit_bytes=vmem_limit),
        )(*args)

    try:
        return build_and_run(True)
    except Exception:
        # TODO(synk): this jax build rejected pipeline_mode=pl.Buffered(1); fall back
        # to default double-buffered weights (correct, just more VMEM).
        return build_and_run(False)


# ----------------------------- kernel 3: fused decoder + bilinear upsample ---------

def _decoder_kernel(x_ref, g_ref, b_ref, hwt_ref, hb_ref, wh_ref, ww_ref, o_ref):
    f32 = jnp.float32
    bf16 = jnp.bfloat16
    x = x_ref[0].astype(f32)                                     # (gh, gw, D)
    mu = jnp.mean(x, axis=-1, keepdims=True)
    var = jnp.mean(jnp.square(x - mu), axis=-1, keepdims=True)
    h = (x - mu) * jax.lax.rsqrt(var + 1e-5) * g_ref[...].astype(f32) \
        + b_ref[...].astype(f32)
    # class-first logits (n_cls, gh, gw): bf16 MXU operands, f32 accumulation
    m = jnp.einsum('cd,hwd->chw', hwt_ref[...].astype(bf16), h.astype(bf16),
                   preferred_element_type=f32) + hb_ref[...].astype(f32)
    # separable bilinear upsample: contract over w first so the big W stays in lanes
    t = jnp.einsum('Ww,chw->chW', ww_ref[...].astype(bf16), m.astype(bf16),
                   preferred_element_type=f32)                   # (n_cls, gh, W)
    o = jnp.einsum('Hh,chW->cHW', wh_ref[...].astype(bf16), t.astype(bf16),
                   preferred_element_type=f32)                   # (n_cls, tH, W)
    o_ref[0] = o.astype(o_ref.dtype)


def _pick_row_tile(H, n_cls, W, budget=32 << 20):
    """Largest multiple-of-8 divisor of H whose double-buffered f32 output tile fits."""
    for cand in (256, 128, 64, 32, 16, 8):
        if H % cand == 0 and 2 * 4 * n_cls * cand * W <= budget:
            return cand
    return H


def decode_upsample(x4, params, wh, ww, n_cls):
    B, gh, gw, D = x4.shape
    H, W = wh.shape[0], ww.shape[0]
    tH = _pick_row_tile(H, n_cls, W)
    nH = H // tH
    bf = lambda a: a.astype(jnp.bfloat16)
    args = [x4,
            params['dec_ln_g'].reshape(1, 1, D),
            params['dec_ln_b'].reshape(1, 1, D),
            bf(params['head_w'].T),                    # (n_cls, D): class-first layout
            params['head_b'].reshape(n_cls, 1, 1),
            bf(wh), bf(ww)]
    in_specs = [pl.BlockSpec((1, gh, gw, D), lambda b, hh: (b, 0, 0, 0)),
                pl.BlockSpec((1, 1, D), lambda b, hh: (0, 0, 0)),
                pl.BlockSpec((1, 1, D), lambda b, hh: (0, 0, 0)),
                pl.BlockSpec((n_cls, D), lambda b, hh: (0, 0)),
                pl.BlockSpec((n_cls, 1, 1), lambda b, hh: (0, 0, 0)),
                pl.BlockSpec((tH, gh), lambda b, hh: (hh, 0)),
                pl.BlockSpec((W, gw), lambda b, hh: (0, 0))]
    est = 4 * (3 * gh * gw * D + n_cls * gh * gw + n_cls * gh * W + 2 * n_cls * tH * W) \
        + 2 * (n_cls * D + H * gh + W * gw)
    vmem_limit = int(min(max(2 * est, 32 << 20), 64 << 20))
    return pl.pallas_call(
        _decoder_kernel,
        out_shape=jax.ShapeDtypeStruct((B, n_cls, H, W), x4.dtype),
        grid=(B, nH),
        in_specs=in_specs,
        out_specs=pl.BlockSpec((1, n_cls, tH, W), lambda b, hh: (b, 0, hh, 0)),
        compiler_params=pltpu.CompilerParams(
            dimension_semantics=("parallel", "parallel"),
            vmem_limit_bytes=vmem_limit),
    )(*args)


# ----------------------------- glue / params -----------------------------

def interp_matrix(n_in, n_out):
    """Row-stochastic matrix matching F.interpolate(mode='bilinear', align_corners=False)."""
    scale = n_in / n_out
    i = np.arange(n_out, dtype=np.float64)
    src = np.maximum((i + 0.5) * scale - 0.5, 0.0)
    i0 = np.minimum(np.floor(src).astype(np.int64), n_in - 1)
    frac = src - i0
    i1 = np.minimum(i0 + 1, n_in - 1)
    W = np.zeros((n_out, n_in), dtype=np.float64)
    W[np.arange(n_out), i0] += 1.0 - frac
    W[np.arange(n_out), i1] += frac
    return jnp.asarray(W.astype(np.float32))


def init_params(key, c_in, d, heads, mlp, n_cls, n_tokens):
    ks = jax.random.split(key, 8)

    def nrm(k, shape, s=0.02):
        return (s * jax.random.normal(k, shape)).astype(jnp.float32)

    z = lambda *s: jnp.zeros(s, jnp.float32)
    one = lambda *s: jnp.ones(s, jnp.float32)
    return dict(
        pe_w=nrm(ks[0], (c_in * PATCH * PATCH, d)), pe_b=z(d),
        cls=nrm(ks[1], (1, 1, d)), pos=nrm(ks[2], (1, n_tokens, d)),
        ln1_g=one(d), ln1_b=z(d),
        qkv_w=nrm(ks[3], (d, 3 * d)), qkv_b=z(3 * d),
        proj_w=nrm(ks[4], (d, d)), proj_b=z(d),
        ln2_g=one(d), ln2_b=z(d),
        mlp1_w=nrm(ks[5], (d, mlp)), mlp1_b=z(mlp),
        mlp2_w=nrm(ks[6], (mlp, d)), mlp2_b=z(d),
        enc_ln_g=one(d), enc_ln_b=z(d),
        dec_ln_g=one(d), dec_ln_b=z(d),
        head_w=nrm(ks[7], (d, n_cls)), head_b=z(n_cls),
    )


def segmenter_forward(params, im, n_cls, heads=2):
    B, C, H_ori, W_ori = im.shape

    # --- padding(im, patch_size) ---
    pad_h = (-H_ori) % PATCH
    pad_w = (-W_ori) % PATCH
    if pad_h or pad_w:
        im = jnp.pad(im, ((0, 0), (0, 0), (0, pad_h), (0, pad_w)))
    H, W = im.shape[2], im.shape[3]
    gh, gw = H // PATCH, W // PATCH
    N = gh * gw
    D = params['pe_w'].shape[1]

    # --- encoder(im, return_features=True): ViT patch embedding ---
    # TODO(synk): fold this patch extraction into kernel 1 (the in-kernel
    # (C,P,gw,P)->(gw,C*P*P) relayout does not lower cleanly today).
    patches = im.reshape(B, C, gh, PATCH, gw, PATCH)
    patches = patches.transpose(0, 2, 4, 1, 3, 5).reshape(B * N, C * PATCH * PATCH)
    xp = linear_tiled(patches, params['pe_w'].astype(jnp.bfloat16),
                      params['pe_b']).reshape(B, N, D)

    # fused pre-norm transformer block + final encoder LN; cls token & positional
    # embeddings are folded into the kernel and the cls token is dropped inside.
    x = encoder_block(xp, params, heads=heads)                    # (B, N, D)

    # --- decoder(x, (H, W)) + F.interpolate(..., 'bilinear'), fused & row-tiled ---
    x4 = x.reshape(B, gh, gw, D)
    wh = interp_matrix(gh, H)
    ww = interp_matrix(gw, W)
    masks = decode_upsample(x4, params, wh, ww, n_cls)            # (B, n_cls, H, W)

    # --- unpadding(masks, (H_ori, W_ori)) ---
    return masks[:, :, :H_ori, :W_ori]


if __name__ == "__main__":
    key = jax.random.PRNGKey(0)
    k_im, k_p = jax.random.split(key)

    B, C, H, W = 2, 3, 30, 30          # 30 -> padded to 32 (2x2 patch grid)
    D, HEADS, MLP, N_CLS = 32, 2, 64, 8

    im = jax.random.normal(k_im, (B, C, H, W), jnp.float32)

    Hp, Wp = H + (-H) % PATCH, W + (-W) % PATCH
    n_tokens = 1 + (Hp // PATCH) * (Wp // PATCH)
    params = init_params(k_p, c_in=C, d=D, heads=HEADS, mlp=MLP,
                         n_cls=N_CLS, n_tokens=n_tokens)

    out = segmenter_forward(params, im, n_cls=N_CLS, heads=HEADS)
    out = jax.block_until_ready(out)
    assert out.shape == (B, N_CLS, H, W), out.shape
    assert bool(jnp.all(jnp.isfinite(out)))
    print("KERNEL_OK")
</pallas_src>

<mosaic_0001>
module attributes {stable_mosaic.version = 11 : i64} {
  func.func @_linear_kernel(%arg0: i32, %arg1: memref<8x768xf32, #tpu.memory_space<vmem>>, %arg2: memref<768x32xbf16, #tpu.memory_space<vmem>>, %arg3: memref<1x32xf32, #tpu.memory_space<vmem>>, %arg4: memref<8x32xf32, #tpu.memory_space<vmem>>) attributes {dimension_semantics = [#tpu.dimension_semantics<parallel>], iteration_bounds = array<i64: 1>, scalar_prefetch = 0 : i64, scratch_operands = 0 : i64, tpu.core_type = #tpu.core_type<tc>, window_params = [{transform_indices = @transform_0, window_bounds = array<i64: 8, 768>}, {pipeline_mode = #tpu.pipeline_mode<synchronous>, transform_indices = @transform_1, window_bounds = array<i64: 768, 32>}, {pipeline_mode = #tpu.pipeline_mode<synchronous>, transform_indices = @transform_2, window_bounds = array<i64: 1, 32>}, {transform_indices = @transform_3, window_bounds = array<i64: 8, 32>}]} {
    %c0 = arith.constant 0 : index
    %c0_0 = arith.constant 0 : index
    %0 = vector.load %arg1[%c0, %c0_0] : memref<8x768xf32, #tpu.memory_space<vmem>>, vector<8x768xf32>
    %1 = arith.truncf %0 : vector<8x768xf32> to vector<8x768xbf16>
    %c0_1 = arith.constant 0 : index
    %c0_2 = arith.constant 0 : index
    %2 = vector.load %arg2[%c0_1, %c0_2] : memref<768x32xbf16, #tpu.memory_space<vmem>>, vector<768x32xbf16>
    %cst = arith.constant dense<0.000000e+00> : vector<8x32xf32>
    %3 = tpu.matmul %1, %2, %cst {dimension_numbers = #tpu.dot_dimension_numbers<[1], [0], [0], [1], [0, 0, 1, 1], [], []>} : vector<8x768xbf16>, vector<768x32xbf16>, vector<8x32xf32> -> vector<8x32xf32>
    %c0_3 = arith.constant 0 : index
    %c0_4 = arith.constant 0 : index
    %4 = vector.load %arg3[%c0_3, %c0_4] : memref<1x32xf32, #tpu.memory_space<vmem>>, vector<1x32xf32>
    %5 = vector.broadcast %4 : vector<1x32xf32> to vector<8x32xf32>
    %6 = arith.addf %3, %5 : vector<8x32xf32>
    %c0_5 = arith.constant 0 : index
    %c0_6 = arith.constant 0 : index
    %7 = vector.load %arg4[%c0_5, %c0_6] : memref<8x32xf32, #tpu.memory_space<vmem>>, vector<8x32xf32>
    tpu.vector_store %arg4[%c0_5, %c0_6], %6 {strides = array<i32>} : memref<8x32xf32, #tpu.memory_space<vmem>>, vector<8x32xf32>,
    return
  }
  func.func @transform_0(%arg0: i32) -> (i32, i32) {
    %c0_i32 = arith.constant 0 : i32
    %c0_i32_0 = arith.constant 0 : i32
    return %arg0, %c0_i32 : i32, i32
  }
  func.func @transform_1(%arg0: i32) -> (i32, i32) {
    %c0_i32 = arith.constant 0 : i32
    %c0_i32_0 = arith.constant 0 : i32
    %c0_i32_1 = arith.constant 0 : i32
    return %c0_i32, %c0_i32_0 : i32, i32
  }
  func.func @transform_2(%arg0: i32) -> (i32, i32) {
    %c0_i32 = arith.constant 0 : i32
    %c0_i32_0 = arith.constant 0 : i32
    %c0_i32_1 = arith.constant 0 : i32
    return %c0_i32, %c0_i32_0 : i32, i32
  }
  func.func @transform_3(%arg0: i32) -> (i32, i32) {
    %c0_i32 = arith.constant 0 : i32
    %c0_i32_0 = arith.constant 0 : i32
    return %arg0, %c0_i32 : i32, i32
  }
}

</mosaic_0001>

<bundles_post_ra>
// kernel: tpu_custom_call.1
= control target key start
LH: loop header
LB: loop body
LE: loop exit
PB: predicated region body
PF: predicated region fallthrough
CT: control target
= control target key end

     0   :  { %s941_s0 = inlined_call_operand.vmem [shape: f32[8,768], index: 0, kind: input, shape index: {}]   ;;  %s942_s1 = inlined_call_operand.vmem [shape: bf16[768,32], index: 1, kind: input, shape index: {}]   ;;  %s943_s2 = inlined_call_operand.vmem [shape: f32[1,32], index: 2, kind: input, shape index: {}]   ;;  %s944_s3 = inlined_call_operand.hbm [shape: f32[8,32], index: 3, kind: output, shape index: {}]  }
   0x1   :  { %v671_v0 = vld [vmem:[%s942_s1 + $0x40] sm:$0xff]   ;;  %v675_v4 = vld [vmem:[%s942_s1 + $0x48] sm:$0xff]   ;;  %v679_v8 = vld [vmem:[%s942_s1 + $0x50] sm:$0xff]  }
   0x2   :  { %v672_v1 = vld [vmem:[%s942_s1] sm:$0xff]   ;;  %604 = vmatprep.subr.bf16.mxu0 %v671_v0  ;;  %v676_v5 = vld [vmem:[%s942_s1 + $0x8] sm:$0xff]   ;;  %v680_v9 = vld [vmem:[%s942_s1 + $0x10] sm:$0xff]  }
   0x3   :  { %v673_v2 = vld [vmem:[%s942_s1 + $0xc0] sm:$0xff]   ;;  %605 = vmatpush3.bf16.msra.mxu0 %v672_v1  ;;  %v677_v6 = vld [vmem:[%s942_s1 + $0xc8] sm:$0xff]   ;;  %v681_v10 = vld [vmem:[%s942_s1 + $0xd0] sm:$0xff]  }
   0x4   :  { %v674_v3 = vld [vmem:[%s942_s1 + $0x80] sm:$0xff]   ;;  %626 = vmatprep.subr.bf16.mxu1 %v673_v2  ;;  %606 = vmatprep.subr.bf16.mxu0 %v675_v4  ;;  %v678_v7 = vld [vmem:[%s942_s1 + $0x88] sm:$0xff]   ;;  %v682_v11 = vld [vmem:[%s942_s1 + $0x90] sm:$0xff]  }
   0x5   :  { %627 = vmatpush3.bf16.msra.mxu1 %v674_v3  ;;  %v683_v12 = vld [vmem:[%s942_s1 + $0x58] sm:$0xff]   ;;  %v687_v16 = vld [vmem:[%s942_s1 + $0x60] sm:$0xff]   ;;  %v691_v20 = vld [vmem:[%s942_s1 + $0x68] sm:$0xff]  }
   0x6   :  { %628 = vmatprep.subr.bf16.mxu1 %v677_v6  ;;  %v684_v13 = vld [vmem:[%s942_s1 + $0x18] sm:$0xff]   ;;  %v688_v17 = vld [vmem:[%s942_s1 + $0x20] sm:$0xff]   ;;  %v692_v21 = vld [vmem:[%s942_s1 + $0x28] sm:$0xff]  }
   0x7   :  { %607 = vmatpush3.bf16.msra.mxu0 %v676_v5  ;;  %v685_v14 = vld [vmem:[%s942_s1 + $0xd8] sm:$0xff]   ;;  %v689_v18 = vld [vmem:[%s942_s1 + $0xe0] sm:$0xff]   ;;  %v693_v22 = vld [vmem:[%s942_s1 + $0xe8] sm:$0xff]  }
   0x8   :  { %608 = vmatprep.subr.bf16.mxu0 %v679_v8  ;;  %v686_v15 = vld [vmem:[%s942_s1 + $0x98] sm:$0xff]   ;;  %v690_v19 = vld [vmem:[%s942_s1 + $0xa0] sm:$0xff]   ;;  %v694_v23 = vld [vmem:[%s942_s1 + $0xa8] sm:$0xff]  }
   0x9   :  { %629 = vmatpush3.bf16.msra.mxu1 %v678_v7  ;;  %v695_v24 = vld [vmem:[%s942_s1 + $0x70] sm:$0xff]   ;;  %v699_v28 = vld [vmem:[%s942_s1 + $0x78] sm:$0xff]   ;;  %v17_v31 = vld [vmem:[%s941_s0 + $0x8] sm:$0xff] }
   0xa   :  { %630 = vmatprep.subr.bf16.mxu1 %v681_v10  ;;  %v696_v25 = vld [vmem:[%s942_s1 + $0x30] sm:$0xff]   ;;  %v700_v29 = vld [vmem:[%s942_s1 + $0x38] sm:$0xff]   ;;  %v23_v32 = vpack.c.bf16 %v17_v31, %v17_v31  ;;  %v16_v34 = vld [vmem:[%s941_s0] sm:$0xff] }
   0xb   :  { %609 = vmatpush3.bf16.msra.mxu0 %v680_v9  ;;  %v697_v26 = vld [vmem:[%s942_s1 + $0xf0] sm:$0xff]   ;;  %v701_v30 = vld [vmem:[%s942_s1 + $0xf8] sm:$0xff]   ;;  %v22_v35 = vpack.c.bf16 %v16_v34, %v16_v34  ;;  %v703_v36 = vld [vmem:[%s942_s1 + $0x140] sm:$0xff]  }
   0xc   :  { %610 = vmatprep.subr.bf16.mxu0 %v683_v12  ;;  %v698_v27 = vld [vmem:[%s942_s1 + $0xb0] sm:$0xff]   ;;  %v702_v33 = vld [vmem:[%s942_s1 + $0xb8] sm:$0xff]   ;;  %451 = vmatprep.mubr.bf16.mxu0 %v23_v32  ;;  %v704_v39 = vld [vmem:[%s942_s1 + $0x100] sm:$0xff]  }
   0xd   :  { %631 = vmatpush3.bf16.msra.mxu1 %v682_v11  ;;  %v19_v37 = vld [vmem:[%s941_s0 + $0x18] sm:$0xff]  ;;  %v18_v40 = vld [vmem:[%s941_s0 + $0x10] sm:$0xff]  ;;  %v705_v42 = vld [vmem:[%s942_s1 + $0x148] sm:$0xff]  }
   0xe   :  { %632 = vmatprep.subr.bf16.mxu1 %v685_v14  ;;  %v25_v38 = vpack.c.bf16 %v19_v37, %v19_v37  ;;  %v24_v41 = vpack.c.bf16 %v18_v40, %v18_v40  ;;  %v706_v43 = vld [vmem:[%s942_s1 + $0x108] sm:$0xff]   ;;  %v707_v44 = vld [vmem:[%s942_s1 + $0x150] sm:$0xff]   ;;  %v709_v46 = vld [vmem:[%s942_s1 + $0x158] sm:$0xff]  }
   0xf   :  { %611 = vmatpush3.bf16.msra.mxu0 %v684_v13  ;;  %v708_v45 = vld [vmem:[%s942_s1 + $0x110] sm:$0xff]   ;;  %v710_v47 = vld [vmem:[%s942_s1 + $0x118] sm:$0xff]   ;;  %v711_v48 = vld [vmem:[%s942_s1 + $0x160] sm:$0xff]  }
  0x10   :  { %612 = vmatprep.subr.bf16.mxu0 %v687_v16  ;;  %491 = vmatprep.mubr.bf16.mxu1 %v25_v38  ;;  %v712_v49 = vld [vmem:[%s942_s1 + $0x120] sm:$0xff]   ;;  %v713_v50 = vld [vmem:[%s942_s1 + $0x168] sm:$0xff]  }
  0x11   :  { %633 = vmatpush3.bf16.msra.mxu1 %v686_v15  ;;  %v21_v51 = vld [vmem:[%s941_s0 + $0x28] sm:$0xff] }
  0x12   :  { %634 = vmatprep.subr.bf16.mxu1 %v689_v18  ;;  %v27_v52 = vpack.c.bf16 %v21_v51, %v21_v51 }
  0x13   :  { %613 = vmatpush3.bf16.msra.mxu0 %v688_v17 }
  0x14   :  { %614 = vmatprep.subr.bf16.mxu0 %v691_v20 }
  0x15   :  { %635 = vmatpush3.bf16.msra.mxu1 %v690_v19 }
  0x16   :  { %636 = vmatprep.subr.bf16.mxu1 %v693_v22 }
  0x17   :  { %615 = vmatpush3.bf16.msra.mxu0 %v692_v21 }
  0x18   :  { %616 = vmatprep.subr.bf16.mxu0 %v695_v24 }
  0x19   :  { %637 = vmatpush3.bf16.msra.mxu1 %v694_v23 }
  0x1a   :  { %638 = vmatprep.subr.bf16.mxu1 %v697_v26 }
  0x1b   :  { %617 = vmatpush3.bf16.msra.mxu0 %v696_v25 }
  0x1c   :  { %618 = vmatprep.subr.bf16.mxu0 %v699_v28 }
  0x1d   :  { %639 = vmatpush3.bf16.msra.mxu1 %v698_v27 }
  0x1e   :  { %640 = vmatprep.subr.bf16.mxu1 %v701_v30 }
  0x1f   :  { %619 = vmatpush3.bf16.msra.mxu0 %v700_v29 }
  0x20   :  { %648 = vmatprep.subr.bf16.mxu0 %v703_v36 }
  0x21   :  { %641 = vmatpush3.bf16.msra.mxu1 %v702_v33 }
  0x22   :  { %452 = vmatmul.mubr.bf16.vlgmr.msra.gmra.mrb[0].mxu0 %v22_v35 }
  0x23   :  { %649 = vmatpush3.bf16.msra.mxu0 %v704_v39 }
  0x24   :  { %492 = vmatmul.mubr.bf16.vlgmr.msra.gmra.mrb[0].mxu1 %v24_v41  ;;  %650 = vmatprep.subr.bf16.mxu0 %v705_v42 }
  0x27   :  { %651 = vmatpush3.bf16.msra.mxu0 %v706_v43 }
  0x28   :  { %652 = vmatprep.subr.bf16.mxu0 %v707_v44 }
  0x2b   :  { %653 = vmatpush3.bf16.msra.mxu0 %v708_v45 }
  0x2c   :  { %654 = vmatprep.subr.bf16.mxu0 %v709_v46 }
  0x2f   :  { %655 = vmatpush3.bf16.msra.mxu0 %v710_v47 }
  0x30   :  { %656 = vmatprep.subr.bf16.mxu0 %v711_v48 }
  0x31   :  { %8 = vsyncpa [#allocation3], 0  ;;  %v714_v53 = vld [vmem:[%s942_s1 + $0x128] sm:$0xff]   ;;  %531 = vmatprep.mubr.bf16.mxu0 %v27_v52  ;;  %v715_v54 = vld [vmem:[%s942_s1 + $0x170] sm:$0xff]   ;;  %vm539_vm0 = vcmask 261120  }
  0x32   :  { %v716_v55 = vld [vmem:[%s942_s1 + $0x130] sm:$0xff]   ;;  %v717_v56 = vld [vmem:[%s942_s1 + $0x178] sm:$0xff]   ;;  %v20_v58 = vld [vmem:[%s941_s0 + $0x20] sm:$0xff]  ;;  %s743_s0 = smov [#allocation2]  }
  0x33   :  { %657 = vmatpush3.bf16.msra.mxu0 %v712_v49  ;;  %v718_v57 = vld [vmem:[%s942_s1 + $0x138] sm:$0xff]   ;;  %v26_v59 = vpack.c.bf16 %v20_v58, %v20_v58  ;;  %v555_v61 = vld [vmem:[%s943_s2] ss:$0 sm:$0xff]  ;;  %s547_s1 = sshll.u32 %s743_s0, 4  ;;  %s548_s1 = int_to_ptr.vmem [resolvable:$true] %s547_s1 }
  0x34   :  { %658 = vmatprep.subr.bf16.mxu0 %v713_v50  ;;  %s719_s2 = scalar_lea.vmem %s548_s1, 128  ;;  %p724_p1 = scmp.lt.s32.totalorder %s548_s1, %s548_s1 }
  0x35   :  { %p720_p0 = scmp.ne.s32.totalorder %s548_s1, %s719_s2  ;;  %p725_p2 = scmp.lt.s32.totalorder %s719_s2, %s719_s2 }
  0x37   :  { %659 = vmatpush3.bf16.msra.mxu0 %v714_v53  ;;  %p726_p3 = por %p725_p2, %p724_p1 }
  0x38   :  { %660 = vmatprep.subr.bf16.mxu0 %v715_v54 }
  0x39   :  { %p727_p4 = pnand %p726_p3, %p720_p0 }
  0x3b   :  { %661 = vmatpush3.bf16.msra.mxu0 %v716_v55 }
  0x3c   :  { %662 = vmatprep.subr.bf16.mxu0 %v717_v56 }
  0x3f   :  { %663 = vmatpush3.bf16.msra.mxu0 %v718_v57 }
  0x42   :  { %532 = vmatmul.mubr.bf16.vlgmr.msra.gmra.mrb[4].mxu0 %v26_v59 }
  0xf5   :  { %v620_v60 = vpop.f32.mrb[0].mxu0 }
  0xf6   :  { %v621_v62 = vpop.f32.mrb[1].mxu0 }
  0xf7   :  { %v622_v63 = vadd.f32 %v621_v62, %v620_v60  ;;  %v623_v0 = vpop.f32.mrb[2].mxu0  ;;  %v642_v1 = vpop.f32.mrb[0].mxu1 }
  0xf8   :  { %v624_v2 = vpop.f32.mrb[3].mxu0  ;;  %v643_v4 = vpop.f32.mrb[1].mxu1 }
  0xf9   :  { %v454_v3 = vadd.f32 %v622_v63, %v555_v61  ;;  %v644_v5 = vadd.f32 %v643_v4, %v642_v1  ;;  %v645_v6 = vpop.f32.mrb[2].mxu1 }
  0xfa   :  { %v646_v7 = vpop.f32.mrb[3].mxu1 }
  0xfb   :  { %v494_v8 = vadd.f32 %v644_v5, %v454_v3 }
 0x115   :  { %v664_v9 = vpop.f32.mrb[4].mxu0 }
 0x116   :  { %v665_v10 = vpop.f32.mrb[5].mxu0 }
 0x117   :  { %v666_v11 = vadd.f32 %v665_v10, %v664_v9  ;;  %v667_v12 = vpop.f32.mrb[6].mxu0 }
 0x118   :  { %v668_v13 = vpop.f32.mrb[7].mxu0 }
 0x119   :  { %v534_v14 = vadd.f32 %v666_v11, %v494_v8 }
 0x11b   :  { %540 = vst.msk [vmem:[#allocation2] sm:$0xff] %vm539_vm0, %v534_v14 }
 0x11c   :  { %730 = shalt.err (!%p727_p4)
}
 0x11d   :  { %s731_s16 = scalar_lea.hbm %s944_s3, 128 }
 0x11e   :  { %p732_p5 = scmp.ne.s32.totalorder %s944_s3, %s731_s16  ;;  %p735_p6 = scmp.lt.u32.totalorder %s731_s16, %s944_s3 }
 0x120   :  { %p737_p7 = pnand %p735_p6, %p732_p5 }
 0x122   :  { %740 = shalt.err (!%p737_p7)
}
 0x123   :  { %550 = dma.vmem_to_hbm [thread:$0]  %s548_s1, 128, %s944_s3, [#allocation3]  }
 0x124   :  { %741 = dma.done.wait [#allocation3], 128  }
 0x125   :  { %742 = vsyncadd [#allocation3], 4294967168 }
 0x126   :  { %554 = vsyncpa [#allocation3], 1 }

</bundles_post_ra>
